<compile_context>
chip_gen: v5e
topology: v5e:2x2
jax: 0.10.0
libtpu: 0.0.40
codegen_flags: <defaults>
</compile_context>

<pallas_src>
import functools

import jax
import jax.numpy as jnp
from jax import lax
from jax.experimental import pallas as pl
from jax.experimental.pallas import tpu as pltpu


def _round_up(x, m):
    return -(-x // m) * m


def _largest_divisor_leq(n, cap):
    for d in range(min(n, cap), 0, -1):
        if n % d == 0:
            return d
    return 1


def _default_cout_cap():
    # v6e/v7x MXU is 256-wide; v4/v5 gain nothing past 128.
    try:
        kind = jax.devices()[0].device_kind.lower()
    except Exception:
        return 128
    return 128 if ("v5" in kind or "v4" in kind) else 256


def _vmem_capacity_bytes():
    try:
        return int(pltpu.get_tpu_info().vmem_capacity_bytes)
    except Exception:
        return 64 * 1024 * 1024  # conservative (v7x per-TC physical VMEM)


def _pick_batch_tile(n, per_image_step_bytes, cap=4, budget=12 << 20):
    bt = 1
    for d in range(2, min(n, cap) + 1):
        if n % d == 0 and d * per_image_step_bytes <= budget:
            bt = d
    return bt


def _basicconv_kernel(src_ref, w_ref, sb_ref, o_ref, *,
                      taps, mask_dws, w_src, col_shift):
    """One (batch tile) x (Cout tile) grid step.

    src_ref: (bt, n_phase, Cin_pad, L)       flattened, pre-zero-padded source planes
    w_ref:   (tco, n_tap*Cin_pad)            im2col-ordered conv weights
    sb_ref:  (2, tco, 1)                     folded BN [scale; bias] (f32)
    o_ref:   (bt, tco, HWout)                output, flattened lane-dense layout
    taps:    static tuple of (phase, lane_shift, mask_dw)
    """
    bt = o_ref.shape[0]
    hwout = o_ref.shape[2]
    n_phase = src_ref.shape[1]
    L = src_ref.shape[3]

    scale = sb_ref[0]          # (tco, 1) f32
    bias = sb_ref[1]           # (tco, 1) f32
    w_mat = w_ref[...]         # (tco, n_tap*Cin_pad)

    # Source-column validity masks for horizontal wrap (stride-1 path only).
    masks = {}
    if mask_dws:
        iota = lax.broadcasted_iota(jnp.int32, (1, L), 1)
        if (w_src & (w_src - 1)) == 0:          # power-of-two width -> bitwise AND
            col = (iota + col_shift) & (w_src - 1)
        else:
            col = (iota + col_shift) % w_src
        for dw in mask_dws:
            masks[dw] = (col >= dw) if dw > 0 else (col < w_src + dw)

    for b in range(bt):
        raw = [src_ref[b, ph] for ph in range(n_phase)]          # (Cin_pad, L) each
        variants = {(ph, 0): raw[ph] for ph in range(n_phase)}
        for ph in range(n_phase):
            for dw in mask_dws:
                variants[(ph, dw)] = jnp.where(masks[dw], raw[ph],
                                               jnp.zeros_like(raw[ph]))

        # im2col: every tap is a static lane-offset slice of a (pre-masked) plane.
        patches = [variants[(ph, dw)][:, sh:sh + hwout] for (ph, sh, dw) in taps]
        col_mat = patches[0] if len(patches) == 1 else jnp.concatenate(patches, axis=0)

        # One MXU matmul per image: (tco, n_tap*Cin_pad) @ (n_tap*Cin_pad, HWout).
        acc = jnp.dot(w_mat, col_mat, preferred_element_type=jnp.float32)

        # Folded BatchNorm (eval) + LeakyReLU(0.1), fused epilogue in f32.
        y = acc * scale + bias
        y = jnp.maximum(y, 0.1 * y)
        o_ref[b] = y.astype(o_ref.dtype)


def basic_conv(x_nchw, weight_oihw, gamma, beta, running_mean, running_var, *,
               stride=1, eps=1e-5, compute_dtype=jnp.bfloat16,
               out_dtype=jnp.float32, cout_tile=None, batch_tile=None):
    """Forward of BasicConv.  x_nchw: (N, Cin, H, W) -> (N, Cout, Ho, Wo)."""
    N, Cin, H, W = x_nchw.shape
    Cout, Cin_w, KH, KW = weight_oihw.shape
    assert Cin == Cin_w
    assert KH == KW, "BasicConv always uses a square kernel"
    assert KH % 2 == 1, "even kernel sizes unsupported"
    s = int(stride)
    k = KH
    p = k // 2
    Ho = (H + 2 * p - k) // s + 1
    Wo = (W + 2 * p - k) // s + 1
    n_tap = k * k

    itemsize = jnp.dtype(compute_dtype).itemsize
    sub = 8 if itemsize == 4 else (16 if itemsize == 2 else 32)
    Cin_pad = _round_up(Cin, sub)

    xc = x_nchw.astype(compute_dtype)

    if s == 1:
        # Single flattened plane; vertical pad = zeros at front/back of the flat axis,
        # horizontal pad = source-column wrap masks applied in-kernel.
        n_phase = 1
        w_src = W
        F = p * (W + 1)                       # front zero margin (>= p*W + p)
        HWout = H * W                         # == Ho * Wo for stride 1, odd k
        Wout_k = W
        L = _round_up(F + HWout + p * W + p, 128)
        xf = xc.reshape(N, Cin, H * W)
        src = jnp.pad(xf, ((0, 0), (0, 0), (F, L - F - H * W)))
        src = src.reshape(N, 1, Cin, L)
        taps = []
        for kh in range(k):
            for kw in range(k):
                dh, dw = kh - p, kw - p
                taps.append((0, F + dh * W + dw, dw))
        mask_dws = tuple(sorted({dw for (_, _, dw) in taps if dw != 0}))
        col_shift = (-F) % W if mask_dws else 0
    else:
        # Strided path: space-to-depth into s*s phase planes so every tap is a pure
        # lane shift; compute Ho x (Wo+A) lanes and crop the A garbage cols per row.
        A = (k - 1) // s
        Hsrc, Wsrc = Ho + A, Wo + A
        n_phase = s * s
        w_src = Wsrc
        Wout_k = Wsrc
        HWout = Ho * Wout_k
        L = _round_up(Hsrc * Wsrc + A * Wsrc + A, 128)
        pad_b = max(0, s * Hsrc - H - p)
        pad_r = max(0, s * Wsrc - W - p)
        xp = jnp.pad(xc, ((0, 0), (0, 0), (p, pad_b), (p, pad_r)))
        xp = xp[:, :, :s * Hsrc, :s * Wsrc]
        phases = [xp[:, :, ph::s, pw::s] for ph in range(s) for pw in range(s)]
        src = jnp.stack(phases, axis=1)                     # (N, s*s, Cin, Hsrc, Wsrc)
        src = src.reshape(N, n_phase, Cin, Hsrc * Wsrc)
        src = jnp.pad(src, ((0, 0), (0, 0), (0, 0), (0, L - Hsrc * Wsrc)))
        taps = []
        for kh in range(k):
            for kw in range(k):
                ph, ah = kh % s, kh // s
                pw, aw = kw % s, kw // s
                taps.append((ph * s + pw, ah * Wsrc + aw, 0))
        mask_dws = ()
        col_shift = 0

    if Cin_pad > Cin:
        src = jnp.pad(src, ((0, 0), (0, 0), (0, Cin_pad - Cin), (0, 0)))

    # im2col weight layout: row block t (= kh*KW+kw) holds channels 0..Cin_pad-1.
    wt = jnp.transpose(weight_oihw, (2, 3, 0, 1)).reshape(n_tap, Cout, Cin)
    wt = jnp.pad(wt, ((0, 0), (0, 0), (0, Cin_pad - Cin)))
    w_im2col = jnp.transpose(wt, (1, 0, 2)).reshape(Cout, n_tap * Cin_pad)
    w_im2col = w_im2col.astype(compute_dtype)

    # Fold eval-mode BatchNorm into per-channel scale & bias (single operand).
    scale = (gamma / jnp.sqrt(running_var + eps)).astype(jnp.float32)
    bias = (beta - running_mean * scale).astype(jnp.float32)
    scale_bias = jnp.stack([scale, bias], axis=0).reshape(2, Cout, 1)

    # Tiling choices.
    if cout_tile is None:
        cap = _default_cout_cap()
        cout_tile = Cout if Cout <= cap else _largest_divisor_leq(Cout, cap)
    cout_tile = min(int(cout_tile), Cout)
    if Cout % cout_tile:
        cout_tile = _largest_divisor_leq(Cout, cout_tile)
    n_co = Cout // cout_tile

    out_itemsize = jnp.dtype(out_dtype).itemsize
    src_img_bytes = n_phase * Cin_pad * L * itemsize
    out_img_bytes = cout_tile * HWout * out_itemsize
    if batch_tile is None:
        batch_tile = _pick_batch_tile(N, 2 * (src_img_bytes + out_img_bytes))
    bt = max(1, int(batch_tile))
    if N % bt:
        bt = _largest_divisor_leq(N, bt)
    n_nb = N // bt

    kernel = functools.partial(_basicconv_kernel, taps=tuple(taps),
                               mask_dws=tuple(mask_dws), w_src=w_src,
                               col_shift=col_shift)

    grid_spec = pltpu.PrefetchScalarGridSpec(
        num_scalar_prefetch=0,
        grid=(n_nb, n_co),       # batch tiles (outer) x Cout tiles (inner)
        in_specs=[
            pl.BlockSpec((bt, n_phase, Cin_pad, L), lambda nb, co: (nb, 0, 0, 0)),
            pl.BlockSpec((cout_tile, n_tap * Cin_pad), lambda nb, co: (co, 0)),
            pl.BlockSpec((2, cout_tile, 1), lambda nb, co: (0, co, 0)),
        ],
        out_specs=pl.BlockSpec((bt, cout_tile, HWout), lambda nb, co: (nb, co, 0)),
    )

    flops = 2 * N * HWout * Cout * n_tap * Cin_pad
    bytes_accessed = (src.size * itemsize + w_im2col.size * itemsize
                      + scale_bias.size * 4 + N * Cout * HWout * out_itemsize)

    # Per-step VMEM: double-buffered blocks + in-kernel masked copies / im2col / acc.
    vmem_need = (2 * bt * src_img_bytes
                 + 2 * cout_tile * n_tap * Cin_pad * itemsize
                 + 2 * bt * out_img_bytes
                 + n_phase * max(1, len(mask_dws)) * Cin_pad * L * itemsize
                 + n_tap * Cin_pad * HWout * itemsize
                 + 2 * cout_tile * HWout * 4
                 + (2 << 20))
    vmem_cap = _vmem_capacity_bytes()
    vmem_limit = int(min(max(2 * vmem_need, 32 << 20), int(0.85 * vmem_cap)))

    out_flat = pl.pallas_call(
        kernel,
        out_shape=jax.ShapeDtypeStruct((N, Cout, HWout), out_dtype),
        grid_spec=grid_spec,
        compiler_params=pltpu.CompilerParams(
            dimension_semantics=("parallel", "parallel"),
            vmem_limit_bytes=vmem_limit,
        ),
        cost_estimate=pl.CostEstimate(flops=flops, transcendentals=0,
                                      bytes_accessed=int(bytes_accessed)),
    )(src, w_im2col, scale_bias)

    if s == 1:
        return out_flat.reshape(N, Cout, Ho, Wo)
    # Drop the A garbage columns per output row (tiny XLA slice on the small output).
    return out_flat.reshape(N, Cout, Ho, Wout_k)[:, :, :, :Wo]


if __name__ == "__main__":
    key = jax.random.PRNGKey(0)
    k_x, k_w, k_g, k_b, k_m, k_v = jax.random.split(key, 6)

    N, Cin, H, W = 2, 4, 16, 16
    Cout = 8

    x = jax.random.normal(k_x, (N, Cin, H, W), dtype=jnp.float32)
    gamma = 1.0 + 0.1 * jax.random.normal(k_g, (Cout,), dtype=jnp.float32)
    beta = 0.1 * jax.random.normal(k_b, (Cout,), dtype=jnp.float32)
    running_mean = 0.1 * jax.random.normal(k_m, (Cout,), dtype=jnp.float32)
    running_var = jnp.abs(1.0 + 0.1 * jax.random.normal(k_v, (Cout,), dtype=jnp.float32))

    def reference(x_in, w, stride, k):
        conv = lax.conv_general_dilated(
            x_in, w, window_strides=(stride, stride),
            padding=[(k // 2, k // 2)] * 2,
            dimension_numbers=("NCHW", "OIHW", "NCHW"))
        sc = (gamma / jnp.sqrt(running_var + 1e-5)).reshape(1, Cout, 1, 1)
        bi = (beta - running_mean * gamma / jnp.sqrt(running_var + 1e-5)).reshape(1, Cout, 1, 1)
        y = conv * sc + bi
        return jnp.where(y > 0, y, 0.1 * y)

    # Strict f32 checks: the BasicConv configs used in CSPDarknet53-tiny
    # (3x3 stride 1, 1x1 stride 1, 3x3 stride 2 downsample).
    for k, stride in ((3, 1), (1, 1), (3, 2)):
        kw_key = jax.random.fold_in(k_w, 10 * k + stride)
        w = 0.1 * jax.random.normal(kw_key, (Cout, Cin, k, k), dtype=jnp.float32)
        out = basic_conv(x, w, gamma, beta, running_mean, running_var,
                         stride=stride, compute_dtype=jnp.float32)
        out = jax.block_until_ready(out)
        ref = reference(x, w, stride, k)
        Ho = (H + 2 * (k // 2) - k) // stride + 1
        assert out.shape == (N, Cout, Ho, Ho), (out.shape, k, stride)
        assert jnp.allclose(out, ref, atol=1e-4, rtol=1e-4), \
            (k, stride, float(jnp.max(jnp.abs(out - ref))))

    # bf16 compute path (default) vs. a bf16-rounded-input f32 reference.
    k3 = 3
    w = 0.1 * jax.random.normal(jax.random.fold_in(k_w, 99),
                                (Cout, Cin, k3, k3), dtype=jnp.float32)
    out_bf16 = basic_conv(x, w, gamma, beta, running_mean, running_var, stride=1)
    out_bf16 = jax.block_until_ready(out_bf16)
    x_r = x.astype(jnp.bfloat16).astype(jnp.float32)
    w_r = w.astype(jnp.bfloat16).astype(jnp.float32)
    ref_bf16 = reference(x_r, w_r, 1, k3)
    assert jnp.allclose(out_bf16, ref_bf16, atol=1e-2, rtol=1e-2), \
        float(jnp.max(jnp.abs(out_bf16 - ref_bf16)))

    print("KERNEL_OK")
</pallas_src>

<mosaic_0001>
module attributes {stable_mosaic.version = 11 : i64} {
  func.func @_basicconv_kernel(%arg0: i32, %arg1: i32, %arg2: memref<2x1x8x384xf32, #tpu.memory_space<vmem>>, %arg3: memref<8x72xf32, #tpu.memory_space<vmem>>, %arg4: memref<2x8x1xf32, #tpu.memory_space<vmem>>, %arg5: memref<2x8x256xf32, #tpu.memory_space<vmem>>) attributes {dimension_semantics = [#tpu.dimension_semantics<parallel>, #tpu.dimension_semantics<parallel>], iteration_bounds = array<i64: 1, 1>, scalar_prefetch = 0 : i64, scratch_operands = 0 : i64, tpu.core_type = #tpu.core_type<tc>, window_params = [{transform_indices = @transform_0, window_bounds = array<i64: 2, 1, 8, 384>}, {transform_indices = @transform_1, window_bounds = array<i64: 8, 72>}, {transform_indices = @transform_2, window_bounds = array<i64: 2, 8, 1>}, {transform_indices = @transform_3, window_bounds = array<i64: 2, 8, 256>}]} {
    %c0 = arith.constant 0 : index
    %c0_0 = arith.constant 0 : index
    %c0_1 = arith.constant 0 : index
    %0 = vector.load %arg4[%c0, %c0_0, %c0_1] : memref<2x8x1xf32, #tpu.memory_space<vmem>>, vector<1x8x1xf32>
    %1 = vector.shape_cast %0 : vector<1x8x1xf32> to vector<8x1xf32>
    %c1 = arith.constant 1 : index
    %c0_2 = arith.constant 0 : index
    %c0_3 = arith.constant 0 : index
    %2 = vector.load %arg4[%c1, %c0_2, %c0_3] : memref<2x8x1xf32, #tpu.memory_space<vmem>>, vector<1x8x1xf32>
    %3 = vector.shape_cast %2 : vector<1x8x1xf32> to vector<8x1xf32>
    %c0_4 = arith.constant 0 : index
    %c0_5 = arith.constant 0 : index
    %4 = vector.load %arg3[%c0_4, %c0_5] : memref<8x72xf32, #tpu.memory_space<vmem>>, vector<8x72xf32>
    %5 = tpu.iota {dimensions = array<i32: 1>} : vector<1x384xi32>
    %c15_i32 = arith.constant 15 : i32
    %6 = vector.broadcast %c15_i32 : i32 to vector<1x384xi32>
    %7 = arith.addi %5, %6 : vector<1x384xi32>
    %c15_i32_6 = arith.constant 15 : i32
    %8 = vector.broadcast %c15_i32_6 : i32 to vector<1x384xi32>
    %9 = arith.andi %7, %8 : vector<1x384xi32>
    %c15_i32_7 = arith.constant 15 : i32
    %10 = vector.broadcast %c15_i32_7 : i32 to vector<1x384xi32>
    %11 = arith.cmpi slt, %9, %10 : vector<1x384xi32>
    %c1_i32 = arith.constant 1 : i32
    %12 = vector.broadcast %c1_i32 : i32 to vector<1x384xi32>
    %13 = arith.cmpi sge, %9, %12 : vector<1x384xi32>
    %c0_8 = arith.constant 0 : index
    %c0_9 = arith.constant 0 : index
    %c0_10 = arith.constant 0 : index
    %c0_11 = arith.constant 0 : index
    %14 = vector.load %arg2[%c0_8, %c0_9, %c0_10, %c0_11] : memref<2x1x8x384xf32, #tpu.memory_space<vmem>>, vector<1x1x8x384xf32>
    %15 = vector.shape_cast %14 : vector<1x1x8x384xf32> to vector<8x384xf32>
    %cst = arith.constant 0.000000e+00 : f32
    %16 = vector.broadcast %cst : f32 to vector<8x384xf32>
    %17 = vector.shape_cast %11 : vector<1x384xi1> to vector<1x384xi1>
    %18 = vector.broadcast %17 : vector<1x384xi1> to vector<8x384xi1>
    %19 = arith.select %18, %15, %16 : vector<8x384xi1>, vector<8x384xf32>
    %cst_12 = arith.constant 0.000000e+00 : f32
    %20 = vector.broadcast %cst_12 : f32 to vector<8x384xf32>
    %21 = vector.shape_cast %13 : vector<1x384xi1> to vector<1x384xi1>
    %22 = vector.broadcast %21 : vector<1x384xi1> to vector<8x384xi1>
    %23 = arith.select %22, %15, %20 : vector<8x384xi1>, vector<8x384xf32>
    %24 = vector.extract_strided_slice %19 {offsets = [0, 0], sizes = [8, 256], strides = [1, 1]} : vector<8x384xf32> to vector<8x256xf32>
    %25 = vector.extract_strided_slice %15 {offsets = [0, 1], sizes = [8, 256], strides = [1, 1]} : vector<8x384xf32> to vector<8x256xf32>
    %26 = vector.extract_strided_slice %23 {offsets = [0, 2], sizes = [8, 256], strides = [1, 1]} : vector<8x384xf32> to vector<8x256xf32>
    %27 = vector.extract_strided_slice %19 {offsets = [0, 16], sizes = [8, 256], strides = [1, 1]} : vector<8x384xf32> to vector<8x256xf32>
    %28 = vector.extract_strided_slice %15 {offsets = [0, 17], sizes = [8, 256], strides = [1, 1]} : vector<8x384xf32> to vector<8x256xf32>
    %29 = vector.extract_strided_slice %23 {offsets = [0, 18], sizes = [8, 256], strides = [1, 1]} : vector<8x384xf32> to vector<8x256xf32>
    %30 = vector.extract_strided_slice %19 {offsets = [0, 32], sizes = [8, 256], strides = [1, 1]} : vector<8x384xf32> to vector<8x256xf32>
    %31 = vector.extract_strided_slice %15 {offsets = [0, 33], sizes = [8, 256], strides = [1, 1]} : vector<8x384xf32> to vector<8x256xf32>
    %32 = vector.extract_strided_slice %23 {offsets = [0, 34], sizes = [8, 256], strides = [1, 1]} : vector<8x384xf32> to vector<8x256xf32>
    %33 = tpu.concatenate %24, %25, %26, %27, %28, %29, %30, %31, %32 in 0 : vector<8x256xf32>, vector<8x256xf32>, vector<8x256xf32>, vector<8x256xf32>, vector<8x256xf32>, vector<8x256xf32>, vector<8x256xf32>, vector<8x256xf32>, vector<8x256xf32> -> vector<72x256xf32>
    %cst_13 = arith.constant dense<0.000000e+00> : vector<8x256xf32>
    %34 = tpu.matmul %4, %33, %cst_13 {dimension_numbers = #tpu.dot_dimension_numbers<[1], [0], [0], [1], [0, 0, 1, 1], [], []>} : vector<8x72xf32>, vector<72x256xf32>, vector<8x256xf32> -> vector<8x256xf32>
    %35 = vector.broadcast %1 : vector<8x1xf32> to vector<8x256xf32>
    %36 = arith.mulf %34, %35 : vector<8x256xf32>
    %37 = vector.broadcast %3 : vector<8x1xf32> to vector<8x256xf32>
    %38 = arith.addf %36, %37 : vector<8x256xf32>
    %cst_14 = arith.constant 1.000000e-01 : f32
    %39 = vector.broadcast %cst_14 : f32 to vector<8x256xf32>
    %40 = arith.mulf %39, %38 : vector<8x256xf32>
    %41 = arith.maximumf %38, %40 : vector<8x256xf32>
    %c0_15 = arith.constant 0 : index
    %c0_16 = arith.constant 0 : index
    %c0_17 = arith.constant 0 : index
    %42 = vector.load %arg5[%c0_15, %c0_16, %c0_17] : memref<2x8x256xf32, #tpu.memory_space<vmem>>, vector<1x8x256xf32>
    %43 = vector.shape_cast %42 : vector<1x8x256xf32> to vector<8x256xf32>
    %44 = vector.shape_cast %41 : vector<8x256xf32> to vector<1x8x256xf32>
    tpu.vector_store %arg5[%c0_15, %c0_16, %c0_17], %44 {strides = array<i32>} : memref<2x8x256xf32, #tpu.memory_space<vmem>>, vector<1x8x256xf32>,
    %c1_18 = arith.constant 1 : index
    %c0_19 = arith.constant 0 : index
    %c0_20 = arith.constant 0 : index
    %c0_21 = arith.constant 0 : index
    %45 = vector.load %arg2[%c1_18, %c0_19, %c0_20, %c0_21] : memref<2x1x8x384xf32, #tpu.memory_space<vmem>>, vector<1x1x8x384xf32>
    %46 = vector.shape_cast %45 : vector<1x1x8x384xf32> to vector<8x384xf32>
    %cst_22 = arith.constant 0.000000e+00 : f32
    %47 = vector.broadcast %cst_22 : f32 to vector<8x384xf32>
    %48 = vector.shape_cast %11 : vector<1x384xi1> to vector<1x384xi1>
    %49 = vector.broadcast %48 : vector<1x384xi1> to vector<8x384xi1>
    %50 = arith.select %49, %46, %47 : vector<8x384xi1>, vector<8x384xf32>
    %cst_23 = arith.constant 0.000000e+00 : f32
    %51 = vector.broadcast %cst_23 : f32 to vector<8x384xf32>
    %52 = vector.shape_cast %13 : vector<1x384xi1> to vector<1x384xi1>
    %53 = vector.broadcast %52 : vector<1x384xi1> to vector<8x384xi1>
    %54 = arith.select %53, %46, %51 : vector<8x384xi1>, vector<8x384xf32>
    %55 = vector.extract_strided_slice %50 {offsets = [0, 0], sizes = [8, 256], strides = [1, 1]} : vector<8x384xf32> to vector<8x256xf32>
    %56 = vector.extract_strided_slice %46 {offsets = [0, 1], sizes = [8, 256], strides = [1, 1]} : vector<8x384xf32> to vector<8x256xf32>
    %57 = vector.extract_strided_slice %54 {offsets = [0, 2], sizes = [8, 256], strides = [1, 1]} : vector<8x384xf32> to vector<8x256xf32>
    %58 = vector.extract_strided_slice %50 {offsets = [0, 16], sizes = [8, 256], strides = [1, 1]} : vector<8x384xf32> to vector<8x256xf32>
    %59 = vector.extract_strided_slice %46 {offsets = [0, 17], sizes = [8, 256], strides = [1, 1]} : vector<8x384xf32> to vector<8x256xf32>
    %60 = vector.extract_strided_slice %54 {offsets = [0, 18], sizes = [8, 256], strides = [1, 1]} : vector<8x384xf32> to vector<8x256xf32>
    %61 = vector.extract_strided_slice %50 {offsets = [0, 32], sizes = [8, 256], strides = [1, 1]} : vector<8x384xf32> to vector<8x256xf32>
    %62 = vector.extract_strided_slice %46 {offsets = [0, 33], sizes = [8, 256], strides = [1, 1]} : vector<8x384xf32> to vector<8x256xf32>
    %63 = vector.extract_strided_slice %54 {offsets = [0, 34], sizes = [8, 256], strides = [1, 1]} : vector<8x384xf32> to vector<8x256xf32>
    %64 = tpu.concatenate %55, %56, %57, %58, %59, %60, %61, %62, %63 in 0 : vector<8x256xf32>, vector<8x256xf32>, vector<8x256xf32>, vector<8x256xf32>, vector<8x256xf32>, vector<8x256xf32>, vector<8x256xf32>, vector<8x256xf32>, vector<8x256xf32> -> vector<72x256xf32>
    %cst_24 = arith.constant dense<0.000000e+00> : vector<8x256xf32>
    %65 = tpu.matmul %4, %64, %cst_24 {dimension_numbers = #tpu.dot_dimension_numbers<[1], [0], [0], [1], [0, 0, 1, 1], [], []>} : vector<8x72xf32>, vector<72x256xf32>, vector<8x256xf32> -> vector<8x256xf32>
    %66 = vector.broadcast %1 : vector<8x1xf32> to vector<8x256xf32>
    %67 = arith.mulf %65, %66 : vector<8x256xf32>
    %68 = vector.broadcast %3 : vector<8x1xf32> to vector<8x256xf32>
    %69 = arith.addf %67, %68 : vector<8x256xf32>
    %cst_25 = arith.constant 1.000000e-01 : f32
    %70 = vector.broadcast %cst_25 : f32 to vector<8x256xf32>
    %71 = arith.mulf %70, %69 : vector<8x256xf32>
    %72 = arith.maximumf %69, %71 : vector<8x256xf32>
    %c1_26 = arith.constant 1 : index
    %c0_27 = arith.constant 0 : index
    %c0_28 = arith.constant 0 : index
    %73 = vector.load %arg5[%c1_26, %c0_27, %c0_28] : memref<2x8x256xf32, #tpu.memory_space<vmem>>, vector<1x8x256xf32>
    %74 = vector.shape_cast %73 : vector<1x8x256xf32> to vector<8x256xf32>
    %75 = vector.shape_cast %72 : vector<8x256xf32> to vector<1x8x256xf32>
    tpu.vector_store %arg5[%c1_26, %c0_27, %c0_28], %75 {strides = array<i32>} : memref<2x8x256xf32, #tpu.memory_space<vmem>>, vector<1x8x256xf32>,
    return
  }
  func.func @transform_0(%arg0: i32, %arg1: i32) -> (i32, i32, i32, i32) {
    %c0_i32 = arith.constant 0 : i32
    %c0_i32_0 = arith.constant 0 : i32
    %c0_i32_1 = arith.constant 0 : i32
    %c0_i32_2 = arith.constant 0 : i32
    return %arg0, %c0_i32, %c0_i32_0, %c0_i32_1 : i32, i32, i32, i32
  }
  func.func @transform_1(%arg0: i32, %arg1: i32) -> (i32, i32) {
    %c0_i32 = arith.constant 0 : i32
    %c0_i32_0 = arith.constant 0 : i32
    return %arg1, %c0_i32 : i32, i32
  }
  func.func @transform_2(%arg0: i32, %arg1: i32) -> (i32, i32, i32) {
    %c0_i32 = arith.constant 0 : i32
    %c0_i32_0 = arith.constant 0 : i32
    %c0_i32_1 = arith.constant 0 : i32
    return %c0_i32, %arg1, %c0_i32_0 : i32, i32, i32
  }
  func.func @transform_3(%arg0: i32, %arg1: i32) -> (i32, i32, i32) {
    %c0_i32 = arith.constant 0 : i32
    %c0_i32_0 = arith.constant 0 : i32
    return %arg0, %arg1, %c0_i32 : i32, i32, i32
  }
}

</mosaic_0001>

<bundles_post_ra>
// kernel: tpu_custom_call.1
= control target key start
LH: loop header
LB: loop body
LE: loop exit
PB: predicated region body
PF: predicated region fallthrough
CT: control target
= control target key end

     0   :  { %8 = vsyncpa [#allocation3], 0  ;;  %s789_s0 = inlined_call_operand.hbm [shape: f32[2,1,8,384], index: 0, kind: input, shape index: {}]   ;;  %s790_s1 = inlined_call_operand.vmem [shape: f32[8,72], index: 1, kind: input, shape index: {}]   ;;  %s791_s2 = inlined_call_operand.vmem [shape: f32[2,8,1], index: 2, kind: input, shape index: {}]   ;;  %s792_s3 = inlined_call_operand.hbm [shape: f32[2,8,256], index: 3, kind: output, shape index: {}]  }
   0x1   :  { %9 = vsyncpa [#allocation4], 0  ;;  %s14_s14 = sshll.u32 %s789_s0, 4  ;;  %s600_s15 = smov [#allocation2]   ;;  %s15_s14 = int_to_ptr.hbm [resolvable:$true] %s14_s14 }
   0x2   :  { %s16_s16 = sshll.u32 %s600_s15, 4  ;;  %s601_s17 = smov 384   ;;  %s17_s16 = int_to_ptr.vmem [resolvable:$true] %s16_s16 }
   0x3   :  { %s602_s18 = smov 24  }
   0x4   :  { %22 = dma.hbm_to_vmem [thread:$0]  %s15_s14, 768, %s17_s16, [#allocation3], %s601_s17, %s601_s17, %s602_s18  }
   0x5   :  { %596 = dma.done.wait [#allocation3], 768  }
   0x6   :  { %597 = vsyncadd [#allocation3], 4294966528  ;;  %v35_v0 = vlaneseq  ;;  %v638_v8 = vld [vmem:[#allocation2 + $0x18] sm:$0xff]  ;;  %v640_v9 = vld [vmem:[#allocation2 + $0x20] sm:$0xff]  ;;  %s603_s0 = smov 95   ;;  %s604_s19 = smov 94  }
   0x7   :  { %v426_v10 = vpack.i.bf16 %v640_v9, %v638_v8  ;;  %v667_v19 = vld [vmem:[#allocation2] sm:$0xff]  ;;  %v236_v20 = vld [vmem:[#allocation2 + $0x28] sm:$0xff]  ;;  %s605_s20 = smov 96   ;;  %v53_v34 = vld [vmem:[#allocation2 + $0x10] sm:$0xff]  ;;  %s606_s21 = smov 110   ;;  %vm164_vm6 = vcmask 769024  }
   0x8   :  { %v36_v1 = vand.u32 127, %v35_v0  ;;  %v431_v25 = vpack.i.bf16 %v667_v19, %v236_v20  ;;  %v695_v33 = vld [vmem:[#allocation2 + $0x8] sm:$0xff]  ;;  %s607_s22 = smov 111   ;;  %s608_s23 = smov 112   ;;  %vm153_vm7 = vcmask 777216   ;;  %vm142_vm8 = vcmask 785408  }
   0x9   :  { %427 = vrot.lane.b32.xlu1 %v426_v10, %s603_s0  ;;  %v471_v39 = vpack.i.bf16 %v53_v34, %v695_v33  ;;  %s609_s24 = smov 126   ;;  %s610_s25 = smov 127   ;;  %vm131_vm9 = vcmask 900096   ;;  %vm120_vm10 = vcmask 908288   ;;  %vm109_vm11 = vcmask 916480  }
   0xa   :  { %v37_v2 = vadd.s32 128, %v36_v1  ;;  %v39_v3 = vadd.s32 15, %v36_v1  ;;  %v38_v4 = vadd.s32 256, %v36_v1  ;;  %vm95_vm12 = vcmask 1031168   ;;  %s389_s7 = sshll.u32 %s792_s3, 4  ;;  %s613_s8 = smov 256   ;;  %s390_s7 = int_to_ptr.hbm [resolvable:$true] %s389_s7 }
   0xb   :  { %vm81_vm13 = vcmask 1039360   ;;  %vm169_vm14 = vcmask 588800   ;;  %s614_s9 = smov 16  }
   0xc   :  { %v40_v5 = vadd.s32 15, %v37_v2  ;;  %v42_v6 = vand.u32 15, %v39_v3  ;;  %v41_v7 = vadd.s32 15, %v38_v4 }
   0xe   :  { %v43_v11 = vand.u32 15, %v40_v5  ;;  %vm644_vm0 = vcmp.ge.s32.totalorder %v42_v6, 1  ;;  %v44_v13 = vand.u32 15, %v41_v7  ;;  %vm651_vm1 = vcmp.lt.s32.totalorder %v42_v6, 15 }
   0xf   :  { %v240_v14 = vsel %vm644_vm0, %v638_v8, 0.0  ;;  %v237_v21 = vsel %vm651_vm1, %v638_v8, 0.0  ;;  %v69_v28 = vsel %vm644_vm0, %v667_v19, 0.0  ;;  %v60_v30 = vsel %vm651_vm1, %v667_v19, 0.0 }
  0x10   :  { %vm656_vm2 = vcmp.ge.s32.totalorder %v43_v11, 1  ;;  %vm660_vm3 = vcmp.lt.s32.totalorder %v43_v11, 15  ;;  %vm672_vm4 = vcmp.ge.s32.totalorder %v44_v13, 1  ;;  %vm680_vm5 = vcmp.lt.s32.totalorder %v44_v13, 15 }
  0x11   :  { %v241_v18 = vsel %vm656_vm2, %v640_v9, 0.0  ;;  %v238_v24 = vsel %vm660_vm3, %v640_v9, 0.0  ;;  %v242_v29 = vsel %vm672_vm4, %v236_v20, 0.0  ;;  %v239_v31 = vsel %vm680_vm5, %v236_v20, 0.0  ;;  %432 = vrot.lane.b32.xlu1 %v431_v25, %s603_s0 }
  0x12   :  { %v436_v22 = vpack.i.bf16 %v241_v18, %v240_v14  ;;  %v446_v26 = vpack.i.bf16 %v238_v24, %v237_v21  ;;  %v441_v32 = vpack.i.bf16 %v69_v28, %v242_v29  ;;  %v451_v35 = vpack.i.bf16 %v60_v30, %v239_v31 }
  0x13   :  { %v70_v36 = vsel %vm656_vm2, %v695_v33, 0.0  ;;  %v71_v37 = vsel %vm672_vm4, %v53_v34, 0.0  ;;  %v61_v40 = vsel %vm660_vm3, %v695_v33, 0.0  ;;  %v62_v41 = vsel %vm680_vm5, %v53_v34, 0.0 }
  0x14   :  { %437 = vrot.lane.b32.xlu0 %v436_v22, %s604_s19  ;;  %447 = vrot.lane.b32.xlu2 %v446_v26, %s605_s20  ;;  %v456_v38 = vpack.i.bf16 %v71_v37, %v70_v36  ;;  %v486_v42 = vpack.i.bf16 %v62_v41, %v61_v40 }
  0x19   :  { %462 = vrot.lane.b32.xlu1 %v436_v22, %s606_s21 }
  0x1c   :  { %442 = vrot.lane.b32.xlu0 %v441_v32, %s604_s19  ;;  %452 = vrot.lane.b32.xlu2 %v451_v35, %s605_s20 }
  0x21   :  { %477 = vrot.lane.b32.xlu1 %v426_v10, %s607_s22 }
  0x24   :  { %457 = vrot.lane.b32.xlu0 %v456_v38, %s604_s19  ;;  %467 = vrot.lane.b32.xlu2 %v441_v32, %s606_s21 }
  0x29   :  { %492 = vrot.lane.b32.xlu1 %v446_v26, %s608_s23 }
  0x2c   :  { %472 = vrot.lane.b32.xlu0 %v471_v39, %s603_s0  ;;  %482 = vrot.lane.b32.xlu2 %v431_v25, %s607_s22 }
  0x31   :  { %507 = vrot.lane.b32.xlu1 %v436_v22, %s609_s24 }
  0x34   :  { %487 = vrot.lane.b32.xlu0 %v486_v42, %s605_s20  ;;  %497 = vrot.lane.b32.xlu2 %v451_v35, %s608_s23 }
  0x39   :  { %522 = vrot.lane.b32.xlu1 %v426_v10, %s610_s25 }
  0x3c   :  { %502 = vrot.lane.b32.xlu0 %v456_v38, %s606_s21  ;;  %512 = vrot.lane.b32.xlu2 %v441_v32, %s609_s24 }
  0x41   :  { %537 = vrot.lane.b32.xlu1 %v456_v38, %s609_s24 }
  0x44   :  { %517 = vrot.lane.b32.xlu0 %v471_v39, %s607_s22  ;;  %527 = vrot.lane.b32.xlu2 %v431_v25, %s610_s25 }
  0x4c   :  { %532 = vrot.lane.b32.xlu0 %v486_v42, %s608_s23  ;;  %542 = vrot.lane.b32.xlu2 %v471_v39, %s610_s25 }
  0x6e   :  { %v448_v43 = vpop.permute.xlu2 %447 }
  0x6f   :  { %v450_v49 = vunpack.i.h.bf16 %v448_v43  ;;  %v449_v50 = vunpack.i.l.bf16 %v448_v43 }
  0x71   :  { %v308_v57 = vsel %vm142_vm8, %v449_v50, %v450_v49 }
  0x76   :  { %v709_v44 = vpop.permute.xlu2 %452 }
  0x77   :  { %v454_v61 = vunpack.i.l.bf16 %v709_v44  ;;  %v455_v41 = vunpack.i.h.bf16 %v709_v44 }
  0x79   :  { %v309_v5 = vsel %vm142_vm8, %v450_v49, %v454_v61  ;;  %v402_v49 = vld [vmem:[%s791_s2 + $0x8] sm:$0xff] }
  0x7b   :  { %v428_v45 = vpop.permute.xlu1 %427 }
  0x7c   :  { %v430_v46 = vunpack.i.h.bf16 %v428_v45  ;;  %v429_v47 = vunpack.i.l.bf16 %v428_v45 }
  0x7e   :  { %v711_v53 = vpop.permute.xlu2 %467  ;;  %v318_v55 = vsel %vm153_vm7, %v429_v47, %v430_v46 }
  0x7f   :  { %v469_v63 = vunpack.i.l.bf16 %v711_v53 }
  0x83   :  { %v433_v56 = vpop.permute.xlu1 %432 }
  0x84   :  { %v434_v59 = vunpack.i.l.bf16 %v433_v56  ;;  %v435_v27 = vunpack.i.h.bf16 %v433_v56 }
  0x86   :  { %v438_v48 = vpop.permute.xlu0 %437  ;;  %v719_v1 = vpop.permute.xlu2 %482  ;;  %v319_v4 = vsel %vm153_vm7, %v430_v46, %v434_v59 }
  0x87   :  { %v440_v51 = vunpack.i.h.bf16 %v438_v48  ;;  %v439_v52 = vunpack.i.l.bf16 %v438_v48  ;;  %v484_v18 = vunpack.i.l.bf16 %v719_v1  ;;  %v31_v48 = vld [vmem:[%s791_s2] sm:$0xff] }
  0x89   :  { %v328_v54 = vsel %vm164_vm6, %v439_v52, %v440_v51  ;;  %v611_v52 = vmov 0  }
  0x8a   :  { %339 = vmatpush.msra.mxu2 %v328_v54  ;;  %546 = vset.pattern.permute.xlu0 %v611_v52 }
  0x8b   :  { %v463_v0 = vpop.permute.xlu1 %462  ;;  %547 = vset.pattern.permute.xlu1 %v611_v52  ;;  %215 = vperm.xlu0 %546, %v31_v48  }
  0x8c   :  { %340 = vmatpush.msra.mxu2 %v318_v55  ;;  %v465_v2 = vunpack.i.h.bf16 %v463_v0  ;;  %v464_v3 = vunpack.i.l.bf16 %v463_v0  ;;  %222 = vperm.xlu1 %547, %v402_v49  }
  0x8e   :  { %341 = vmatpush.msra.mxu2 %v308_v57  ;;  %v443_v58 = vpop.permute.xlu0 %442  ;;  %v298_v6 = vsel %vm131_vm9, %v464_v3, %v465_v2  ;;  %v299_v7 = vsel %vm131_vm9, %v465_v2, %v469_v63  ;;  %v728_v23 = vpop.permute.xlu2 %497  ;;  %v470_v57 = vunpack.i.h.bf16 %v711_v53  ;;  %v34_v53 = vld [vmem:[%s790_s1] sm:$0xff]  ;;  %s612_s1 = smov [#allocation5]  }
  0x8f   :  { %v444_v60 = vunpack.i.l.bf16 %v443_v58  ;;  %v445_v11 = vunpack.i.h.bf16 %v443_v58  ;;  %v499_v32 = vunpack.i.l.bf16 %v728_v23  ;;  %s387_s4 = sshll.u32 %s612_s1, 4  ;;  %s388_s4 = int_to_ptr.vmem [resolvable:$true] %s387_s4 }
  0x90   :  { %342 = vmatpush.msra.mxu2 %v298_v6 }
  0x91   :  { %v329_v62 = vsel %vm164_vm6, %v440_v51, %v444_v60 }
  0x92   :  { %359 = vmatpush.msra.mxu3 %v329_v62 }
  0x93   :  { %v478_v20 = vpop.permute.xlu1 %477 }
  0x94   :  { %360 = vmatpush.msra.mxu3 %v319_v4  ;;  %v480_v21 = vunpack.i.h.bf16 %v478_v20  ;;  %v479_v22 = vunpack.i.l.bf16 %v478_v20 }
  0x96   :  { %v458_v10 = vpop.permute.xlu0 %457  ;;  %361 = vmatpush.msra.mxu3 %v309_v5  ;;  %v288_v24 = vsel %vm120_vm10, %v479_v22, %v480_v21  ;;  %v289_v25 = vsel %vm120_vm10, %v480_v21, %v484_v18  ;;  %v737_v40 = vpop.permute.xlu2 %512 }
  0x97   :  { %v460_v12 = vunpack.i.h.bf16 %v458_v10  ;;  %v459_v13 = vunpack.i.l.bf16 %v458_v10  ;;  %343 = vmatpush.msra.mxu2 %v288_v24  ;;  %v514_v46 = vunpack.i.l.bf16 %v737_v40  ;;  %v515_v24 = vunpack.i.h.bf16 %v737_v40 }
  0x98   :  { %362 = vmatpush.msra.mxu3 %v299_v7  ;;  %v485_v7 = vunpack.i.h.bf16 %v719_v1 }
  0x99   :  { %v165_v14 = vsel %vm164_vm6, %v445_v11, %v459_v13  ;;  %v166_v16 = vsel %vm164_vm6, %v459_v13, %v460_v12 }
  0x9a   :  { %180 = vmatpush.msra.mxu0 %v165_v14  ;;  %200 = vmatpush.msra.mxu1 %v166_v16  ;;  %v500_v16 = vunpack.i.h.bf16 %v728_v23 }
  0x9b   :  { %363 = vmatpush.msra.mxu3 %v289_v25  ;;  %v493_v34 = vpop.permute.xlu1 %492 }
  0x9c   :  { %v495_v35 = vunpack.i.h.bf16 %v493_v34  ;;  %v494_v36 = vunpack.i.l.bf16 %v493_v34 }
  0x9e   :  { %v473_v26 = vpop.permute.xlu0 %472  ;;  %v278_v37 = vsel %vm109_vm11, %v494_v36, %v495_v35  ;;  %v279_v38 = vsel %vm109_vm11, %v495_v35, %v499_v32  ;;  %v528_v60 = vpop.permute.xlu2 %527 }
  0x9f   :  { %v475_v28 = vunpack.i.h.bf16 %v473_v26  ;;  %v474_v29 = vunpack.i.l.bf16 %v473_v26  ;;  %344 = vmatpush.msra.mxu2 %v278_v37  ;;  %364 = vmatpush.msra.mxu3 %v279_v38  ;;  %v529_v62 = vunpack.i.l.bf16 %v528_v60  ;;  %v530_v25 = vunpack.i.h.bf16 %v528_v60 }
  0xa1   :  { %v154_v30 = vsel %vm153_vm7, %v435_v27, %v474_v29  ;;  %v155_v31 = vsel %vm153_vm7, %v474_v29, %v475_v28 }
  0xa2   :  { %181 = vmatpush.msra.mxu0 %v154_v30  ;;  %201 = vmatpush.msra.mxu1 %v155_v31 }
  0xa3   :  { %v508_v50 = vpop.permute.xlu1 %507 }
  0xa4   :  { %v510_v44 = vunpack.i.h.bf16 %v508_v50  ;;  %v509_v51 = vunpack.i.l.bf16 %v508_v50 }
  0xa6   :  { %v488_v39 = vpop.permute.xlu0 %487  ;;  %v265_v54 = vsel %vm95_vm12, %v509_v51, %v510_v44  ;;  %v266_v55 = vsel %vm95_vm12, %v510_v44, %v514_v46  ;;  %v543_v18 = vpop.permute.xlu2 %542 }
  0xa7   :  { %v490_v42 = vunpack.i.h.bf16 %v488_v39  ;;  %v489_v43 = vunpack.i.l.bf16 %v488_v39  ;;  %345 = vmatpush.msra.mxu2 %v265_v54  ;;  %365 = vmatpush.msra.mxu3 %v266_v55  ;;  %v545_v21 = vunpack.i.h.bf16 %v543_v18  ;;  %v544_v26 = vunpack.i.l.bf16 %v543_v18 }
  0xa9   :  { %v144_v45 = vsel %vm142_vm8, %v489_v43, %v490_v42  ;;  %v143_v47 = vsel %vm142_vm8, %v455_v41, %v489_v43  ;;  %v83_v30 = vsel %vm81_vm13, %v544_v26, %v545_v21  ;;  %v82_v31 = vsel %vm81_vm13, %v530_v25, %v544_v26 }
  0xaa   :  { %202 = vmatpush.msra.mxu1 %v144_v45  ;;  %182 = vmatpush.msra.mxu0 %v143_v47 }
  0xab   :  { %v523_v0 = vpop.permute.xlu1 %522 }
  0xac   :  { %v525_v2 = vunpack.i.h.bf16 %v523_v0  ;;  %v524_v3 = vunpack.i.l.bf16 %v523_v0 }
  0xae   :  { %v503_v56 = vpop.permute.xlu0 %502  ;;  %v252_v4 = vsel %vm81_vm13, %v524_v3, %v525_v2  ;;  %v253_v5 = vsel %vm81_vm13, %v525_v2, %v529_v62 }
  0xaf   :  { %v505_v58 = vunpack.i.h.bf16 %v503_v56  ;;  %v504_v59 = vunpack.i.l.bf16 %v503_v56  ;;  %346 = vmatpush.msra.mxu2 %v252_v4  ;;  %366 = vmatpush.msra.mxu3 %v253_v5 }
  0xb1   :  { %v133_v61 = vsel %vm131_vm9, %v504_v59, %v505_v58  ;;  %v132_v63 = vsel %vm131_vm9, %v470_v57, %v504_v59  ;;  %407 = vmatpush.msk.msra.mxu2 %vm651_vm1, %v638_v8  ;;  %409 = vmatpush.msk.msra.mxu3 %vm660_vm3, %v640_v9 }
  0xb2   :  { %203 = vmatpush.msra.mxu1 %v133_v61  ;;  %183 = vmatpush.msra.mxu0 %v132_v63 }
  0xb3   :  { %408 = vmatmul.msk.f32.vlgmr.msra.gmra.mxu2 %vm169_vm14, %v34_v53  ;;  %410 = vmatmul.msk.f32.vlgmr.msra.gmra.mxu3 %vm169_vm14, %v34_v53  ;;  %v538_v1 = vpop.permute.xlu1 %537 }
  0xb4   :  { %v540_v14 = vunpack.i.h.bf16 %v538_v1  ;;  %v539_v20 = vunpack.i.l.bf16 %v538_v1 }
  0xb6   :  { %v518_v6 = vpop.permute.xlu0 %517  ;;  %v97_v29 = vsel %vm95_vm12, %v539_v20, %v540_v14  ;;  %v96_v23 = vsel %vm95_vm12, %v515_v24, %v539_v20 }
  0xb7   :  { %v520_v10 = vunpack.i.h.bf16 %v518_v6  ;;  %v519_v11 = vunpack.i.l.bf16 %v518_v6 }
  0xb9   :  { %v122_v12 = vsel %vm120_vm10, %v519_v11, %v520_v10  ;;  %v121_v13 = vsel %vm120_vm10, %v485_v7, %v519_v11 }
  0xba   :  { %204 = vmatpush.msra.mxu1 %v122_v12  ;;  %184 = vmatpush.msra.mxu0 %v121_v13 }
  0xbe   :  { %v533_v8 = vpop.permute.xlu0 %532 }
  0xbf   :  { %v535_v22 = vunpack.i.h.bf16 %v533_v8  ;;  %v534_v9 = vunpack.i.l.bf16 %v533_v8 }
  0xc1   :  { %v110_v27 = vsel %vm109_vm11, %v500_v16, %v534_v9  ;;  %v111_v28 = vsel %vm109_vm11, %v534_v9, %v535_v22 }
  0xc2   :  { %185 = vmatpush.msra.mxu0 %v110_v27  ;;  %205 = vmatpush.msra.mxu1 %v111_v28 }
  0xc4   :  { %186 = vmatpush.msra.mxu0 %v96_v23  ;;  %206 = vmatpush.msra.mxu1 %v97_v29 }
  0xc6   :  { %187 = vmatpush.msra.mxu0 %v82_v31  ;;  %207 = vmatpush.msra.mxu1 %v83_v30 }
  0xc8   :  { %403 = vmatpush.msk.msra.mxu0 %vm651_vm1, %v667_v19  ;;  %405 = vmatpush.msk.msra.mxu1 %vm660_vm3, %v695_v33 }
  0xc9   :  { %404 = vmatmul.msk.f32.vlgmr.msra.gmra.mxu0 %vm169_vm14, %v34_v53  ;;  %406 = vmatmul.msk.f32.vlgmr.msra.gmra.mxu1 %vm169_vm14, %v34_v53 }
  0xfd   :  { %v216_v32 = vpop.permute.xlu0 %215 }
  0xfe   :  { %v223_v34 = vpop.permute.xlu1 %222 }
 0x136   :  { %v349_v35 = vpop.f32.mrf.mxu2  ;;  %v369_v36 = vpop.f32.mrf.mxu3 }
 0x137   :  { %v372_v37 = vmul.f32 %v349_v35, %v216_v32  ;;  %v373_v38 = vmul.f32 %v369_v36, %v216_v32 }
 0x139   :  { %v374_v39 = vadd.f32 %v372_v37, %v223_v34  ;;  %v375_v40 = vadd.f32 %v373_v38, %v223_v34 }
 0x13b   :  { %v376_v41 = vmul.f32 0.1, %v374_v39  ;;  %v377_v42 = vmul.f32 0.1, %v375_v40 }
 0x13d   :  { %v378_v15 = vmax.f32 %v374_v39, %v376_v41  ;;  %v379_v19 = vmax.f32 %v375_v40, %v377_v42 }
 0x13f   :  { %381 = vst [vmem:[#allocation5 + $0x10] sm:$0xff] %v378_v15 }
 0x140   :  { %382 = vst [vmem:[#allocation5 + $0x18] sm:$0xff] %v379_v19 }
 0x146   :  { %v190_v43 = vpop.f32.mrf.mxu0  ;;  %v210_v17 = vpop.f32.mrf.mxu1 }
 0x147   :  { %v218_v33 = vmul.f32 %v216_v32, %v190_v43  ;;  %v219_v45 = vmul.f32 %v216_v32, %v210_v17 }
 0x149   :  { %v225_v46 = vadd.f32 %v223_v34, %v218_v33  ;;  %v226_v47 = vadd.f32 %v223_v34, %v219_v45 }
 0x14b   :  { %v227_v48 = vmul.f32 0.1, %v225_v46  ;;  %v228_v49 = vmul.f32 0.1, %v226_v47 }
 0x14d   :  { %v229_v50 = vmax.f32 %v225_v46, %v227_v48  ;;  %v230_v44 = vmax.f32 %v226_v47, %v228_v49 }
 0x14f   :  { %231 = vst [vmem:[#allocation5] sm:$0xff] %v229_v50 }
 0x150   :  { %232 = vst [vmem:[#allocation5 + $0x8] sm:$0xff] %v230_v44 }
 0x151   :  { %395 = dma.vmem_to_hbm [thread:$0]  %s388_s4, 512, %s390_s7, [#allocation4], %s613_s8, %s613_s8, %s614_s9  }
 0x152   :  { %598 = dma.done.wait [#allocation4], 512  }
 0x153   :  { %599 = vsyncadd [#allocation4], 4294966784 }
 0x154   :  { %400 = vsyncpa [#allocation3], 1 }
 0x155   :  { %401 = vsyncpa [#allocation4], 1 }

</bundles_post_ra>
